<compile_context>
chip_gen: v7x
topology: tpu7x:2x2x1
jax: 0.10.0
libtpu: 0.0.40
codegen_flags: <defaults>
</compile_context>

<pallas_src>
import functools

import jax
import jax.numpy as jnp
from jax.experimental import pallas as pl
from jax.experimental.pallas import tpu as pltpu

LANE = 128             # TPU vreg lane width (only used for the optional lane-dense output)
ROW_ALIGN = 16         # batch-tile row granularity safe for both f32 (8) and bf16 (16)
SPLIT_THRESHOLD = 1024 # batches above this always get >= 2 tiles (v7x has 2 TensorCores)


def _round_up(x, m):
    return (x + m - 1) // m * m


def _choose_batch_tile(batch, block_b):
    """Pick the number of batch rows handled per grid step (static Python int)."""
    if batch <= min(block_b, SPLIT_THRESHOLD):
        # One full-extent tile: per-step overhead paid exactly once, and a block equal
        # to the full array dims satisfies the TPU tiling rule for any batch size.
        return batch
    block_b = max(ROW_ALIGN, block_b - block_b % ROW_ALIGN)
    # Ensure >= 2 tiles so dimension_semantics=("parallel",) can shard across v7x cores.
    half = _round_up(pl.cdiv(batch, 2), ROW_ALIGN)
    return min(block_b, half)


def _actor_kernel(obs_ref,
                  w1_ref, b1_ref,
                  w2_ref, b2_ref,
                  wmu_ref, bmu_ref,
                  mu_ref):
    """Fused MLP actor forward: two hidden ReLU layers + mu head.

    All dots accumulate in f32 on the MXU (preferred_element_type); activations are cast
    back to the weight dtype (bf16 by default) between layers so each matmul uses the
    native bf16 MXU path instead of multi-pass f32 emulation.
    """
    x = obs_ref[...]

    # Hidden layer 1 (ReLU)
    h = jnp.dot(x, w1_ref[...], preferred_element_type=jnp.float32) + b1_ref[...]
    h = jnp.maximum(h, 0.0)

    # Hidden layer 2 -- output_activation of the reference `net` is also ReLU.
    h = jnp.dot(h.astype(w2_ref.dtype), w2_ref[...],
                preferred_element_type=jnp.float32) + b2_ref[...]
    h = jnp.maximum(h, 0.0)

    # mu head.  The log_sigma head of the reference is computed then discarded by
    # forward(); it is intentionally omitted here (output-equivalent, ~1/3 less MXU work
    # and one fewer output store).
    mu = jnp.dot(h.astype(wmu_ref.dtype), wmu_ref[...],
                 preferred_element_type=jnp.float32) + bmu_ref[...]
    mu_ref[...] = mu.astype(mu_ref.dtype)


def prepare_params(params, dtype=jnp.bfloat16):
    """One-time cast of the (pre-transposed) weights/biases to the compute dtype.

    bf16 storage halves weight DMA / VMEM residency and uses the MXU's native bf16 path
    (dots still accumulate in f32).  Pass dtype=jnp.float32 for exact f32 math.
    No feature-dim padding: Mosaic pads K/N inside vregs, so HBM-side padding would only
    inflate DMA traffic.
    """
    keep = ("w1", "b1", "w2", "b2", "w_mu", "b_mu")
    return {k: jnp.asarray(params[k], dtype) for k in keep}


def squashed_gaussian_actor_forward(obs, params, *, block_b=2048, lane_dense_out=False,
                                    out_dtype=jnp.float32):
    """Runs the fused Pallas kernel.  Returns (mu, mu, mu) to match the PyTorch forward().

    block_b: max batch rows per grid step (static).  2048 is a good default on v5e/v6e;
      v7x (~3.2 TB/s HBM, 2 TCs) can push 4096 and still sits far under its 64 MiB VMEM.
    lane_dense_out: store mu into a 128-lane-padded slab (unmasked full-lane vst) and
      slice it back in the wrapper.  Default False = compact (B, act_dim) store (16x less
      output HBM traffic); set True on v5e if masked sub-128 stores show up in profiles.
    """
    B, obs_dim = obs.shape
    w1, b1 = params["w1"], params["b1"]
    w2, b2 = params["w2"], params["b2"]
    w_mu, b_mu = params["w_mu"], params["b_mu"]
    act_dim = w_mu.shape[1]

    # Keep obs in the weights' (compute) dtype.  In a real rollout pipeline obs should
    # already arrive in this dtype so the cast below is a no-op, not an extra HBM pass.
    if obs.dtype != w1.dtype:
        obs = obs.astype(w1.dtype)

    if lane_dense_out:
        out_cols = _round_up(act_dim, LANE)
        # Tiny (hidden x 128) pads; pre-pad once in prepare_params for production v5e use.
        w_mu = jnp.pad(w_mu, ((0, 0), (0, out_cols - act_dim)))
        b_mu = jnp.pad(b_mu, ((0, 0), (0, out_cols - act_dim)))
    else:
        out_cols = act_dim

    tb = _choose_batch_tile(B, block_b)
    grid = (pl.cdiv(B, tb),)   # partial trailing tile is masked by Pallas (no batch pad)

    # Weights/biases: full-extent blocks with a constant index_map -> DMA'd once and kept
    # VMEM-resident across all batch tiles.
    pinned = lambda a: pl.BlockSpec(a.shape, lambda i: (0, 0))

    mu = pl.pallas_call(
        _actor_kernel,
        grid=grid,
        in_specs=[
            pl.BlockSpec((tb, obs_dim), lambda i: (i, 0)),   # obs: tiled over batch only
            pinned(w1), pinned(b1),
            pinned(w2), pinned(b2),
            pinned(w_mu), pinned(b_mu),
        ],
        out_specs=pl.BlockSpec((tb, out_cols), lambda i: (i, 0)),
        out_shape=jax.ShapeDtypeStruct((B, out_cols), out_dtype),
        compiler_params=pltpu.CompilerParams(
            # Batch tiles are independent -> shard the grid across TensorCores (v7x).
            # Verify in a trace that both cores engage; if not, switch to
            # pltpu.CORE_PARALLEL / pl.core_map with an explicit core axis.
            dimension_semantics=("parallel",),
        ),
    )(obs, w1, b1, w2, b2, w_mu, b_mu)

    if lane_dense_out:
        mu = mu[:, :act_dim]
    # Reference forward returns the mu head three times; log_std is computed then dropped.
    return (mu, mu, mu)


def init_params(key, obs_dim, act_dim, hidden_sizes):
    """Deterministic synthetic parameters (PyTorch Linear shapes, stored transposed)."""
    sizes = [obs_dim] + list(hidden_sizes)
    keys = jax.random.split(key, 8)
    params = {}
    params["w1"] = jax.random.normal(keys[0], (sizes[0], sizes[1]), jnp.float32) * 0.1
    params["b1"] = jax.random.normal(keys[1], (1, sizes[1]), jnp.float32) * 0.01
    params["w2"] = jax.random.normal(keys[2], (sizes[1], sizes[2]), jnp.float32) * 0.1
    params["b2"] = jax.random.normal(keys[3], (1, sizes[2]), jnp.float32) * 0.01
    params["w_mu"] = jax.random.normal(keys[4], (sizes[2], act_dim), jnp.float32) * 0.1
    params["b_mu"] = jax.random.normal(keys[5], (1, act_dim), jnp.float32) * 0.01
    # log_sigma params exist to mirror the module, but forward() discards that head.
    params["w_ls"] = jax.random.normal(keys[6], (sizes[2], act_dim), jnp.float32) * 0.1
    params["b_ls"] = jax.random.normal(keys[7], (1, act_dim), jnp.float32) * 0.01
    return params


if __name__ == "__main__":
    key = jax.random.PRNGKey(0)
    k_obs, k_par, k_obs_big = jax.random.split(key, 3)

    # Small shapes consistent with the module.
    batch, obs_dim, act_dim, hidden_sizes = 8, 32, 8, (32, 32)

    raw = init_params(k_par, obs_dim, act_dim, hidden_sizes)

    def reference(o):   # pure-JAX reference, same math as the PyTorch forward
        h = jnp.maximum(o @ raw["w1"] + raw["b1"], 0.0)
        h = jnp.maximum(h @ raw["w2"] + raw["b2"], 0.0)
        return h @ raw["w_mu"] + raw["b_mu"]

    fwd = jax.jit(squashed_gaussian_actor_forward)

    # 1) Exact-math check: f32 params, small batch, single full-extent tile.
    obs = jax.random.normal(k_obs, (batch, obs_dim), jnp.float32)
    mu_ref = reference(obs)
    params_f32 = prepare_params(raw, dtype=jnp.float32)
    out = jax.block_until_ready(fwd(obs, params_f32))
    assert out[0].shape == (batch, act_dim)
    assert out[0].dtype == jnp.float32
    assert jnp.allclose(out[0], mu_ref, atol=1e-4, rtol=1e-4)
    assert jnp.allclose(out[1], out[0]) and jnp.allclose(out[2], out[0])

    # 2) Fast path: bf16 params/obs, multi-tile grid with a masked partial trailing tile.
    params_bf16 = prepare_params(raw)                       # default bf16
    obs_big = jax.random.normal(k_obs_big, (2050, obs_dim), jnp.float32)
    mu_ref_big = reference(obs_big)
    out_big = jax.block_until_ready(fwd(obs_big, params_bf16))
    assert out_big[0].shape == (2050, act_dim)
    assert jnp.allclose(out_big[0], mu_ref_big, atol=3e-2, rtol=3e-2)

    # 3) v5e-style lane-dense output store (full 128-lane vst, sliced back in the wrapper).
    fwd_dense = jax.jit(functools.partial(squashed_gaussian_actor_forward,
                                          lane_dense_out=True))
    out_dense = jax.block_until_ready(fwd_dense(obs_big, params_bf16))
    assert out_dense[0].shape == (2050, act_dim)
    assert jnp.allclose(out_dense[0], out_big[0], atol=1e-6, rtol=1e-6)

    print("KERNEL_OK")
</pallas_src>

<mosaic_0001>
module attributes {stable_mosaic.version = 11 : i64} {
  func.func @_actor_kernel(%arg0: i32, %arg1: memref<8x32xf32, #tpu.memory_space<vmem>>, %arg2: memref<32x32xf32, #tpu.memory_space<vmem>>, %arg3: memref<1x32xf32, #tpu.memory_space<vmem>>, %arg4: memref<32x32xf32, #tpu.memory_space<vmem>>, %arg5: memref<1x32xf32, #tpu.memory_space<vmem>>, %arg6: memref<32x8xf32, #tpu.memory_space<vmem>>, %arg7: memref<1x8xf32, #tpu.memory_space<vmem>>, %arg8: memref<8x8xf32, #tpu.memory_space<vmem>>) attributes {dimension_semantics = [#tpu.dimension_semantics<parallel>], iteration_bounds = array<i64: 1>, scalar_prefetch = 0 : i64, scratch_operands = 0 : i64, tpu.core_type = #tpu.core_type<tc>, window_params = [{transform_indices = @transform_0, window_bounds = array<i64: 8, 32>}, {pipeline_mode = #tpu.pipeline_mode<synchronous>, transform_indices = @transform_1, window_bounds = array<i64: 32, 32>}, {pipeline_mode = #tpu.pipeline_mode<synchronous>, transform_indices = @transform_2, window_bounds = array<i64: 1, 32>}, {pipeline_mode = #tpu.pipeline_mode<synchronous>, transform_indices = @transform_3, window_bounds = array<i64: 32, 32>}, {pipeline_mode = #tpu.pipeline_mode<synchronous>, transform_indices = @transform_4, window_bounds = array<i64: 1, 32>}, {pipeline_mode = #tpu.pipeline_mode<synchronous>, transform_indices = @transform_5, window_bounds = array<i64: 32, 8>}, {pipeline_mode = #tpu.pipeline_mode<synchronous>, transform_indices = @transform_6, window_bounds = array<i64: 1, 8>}, {transform_indices = @transform_7, window_bounds = array<i64: 8, 8>}]} {
    %c0 = arith.constant 0 : index
    %c0_0 = arith.constant 0 : index
    %0 = vector.load %arg1[%c0, %c0_0] : memref<8x32xf32, #tpu.memory_space<vmem>>, vector<8x32xf32>
    %c0_1 = arith.constant 0 : index
    %c0_2 = arith.constant 0 : index
    %1 = vector.load %arg2[%c0_1, %c0_2] : memref<32x32xf32, #tpu.memory_space<vmem>>, vector<32x32xf32>
    %cst = arith.constant dense<0.000000e+00> : vector<8x32xf32>
    %2 = tpu.matmul %0, %1, %cst {dimension_numbers = #tpu.dot_dimension_numbers<[1], [0], [0], [1], [0, 0, 1, 1], [], []>} : vector<8x32xf32>, vector<32x32xf32>, vector<8x32xf32> -> vector<8x32xf32>
    %c0_3 = arith.constant 0 : index
    %c0_4 = arith.constant 0 : index
    %3 = vector.load %arg3[%c0_3, %c0_4] : memref<1x32xf32, #tpu.memory_space<vmem>>, vector<1x32xf32>
    %4 = vector.broadcast %3 : vector<1x32xf32> to vector<8x32xf32>
    %5 = arith.addf %2, %4 : vector<8x32xf32>
    %cst_5 = arith.constant 0.000000e+00 : f32
    %6 = vector.broadcast %cst_5 : f32 to vector<8x32xf32>
    %7 = arith.maximumf %5, %6 : vector<8x32xf32>
    %c0_6 = arith.constant 0 : index
    %c0_7 = arith.constant 0 : index
    %8 = vector.load %arg4[%c0_6, %c0_7] : memref<32x32xf32, #tpu.memory_space<vmem>>, vector<32x32xf32>
    %cst_8 = arith.constant dense<0.000000e+00> : vector<8x32xf32>
    %9 = tpu.matmul %7, %8, %cst_8 {dimension_numbers = #tpu.dot_dimension_numbers<[1], [0], [0], [1], [0, 0, 1, 1], [], []>} : vector<8x32xf32>, vector<32x32xf32>, vector<8x32xf32> -> vector<8x32xf32>
    %c0_9 = arith.constant 0 : index
    %c0_10 = arith.constant 0 : index
    %10 = vector.load %arg5[%c0_9, %c0_10] : memref<1x32xf32, #tpu.memory_space<vmem>>, vector<1x32xf32>
    %11 = vector.broadcast %10 : vector<1x32xf32> to vector<8x32xf32>
    %12 = arith.addf %9, %11 : vector<8x32xf32>
    %cst_11 = arith.constant 0.000000e+00 : f32
    %13 = vector.broadcast %cst_11 : f32 to vector<8x32xf32>
    %14 = arith.maximumf %12, %13 : vector<8x32xf32>
    %c0_12 = arith.constant 0 : index
    %c0_13 = arith.constant 0 : index
    %15 = vector.load %arg6[%c0_12, %c0_13] : memref<32x8xf32, #tpu.memory_space<vmem>>, vector<32x8xf32>
    %cst_14 = arith.constant dense<0.000000e+00> : vector<8x8xf32>
    %16 = tpu.matmul %14, %15, %cst_14 {dimension_numbers = #tpu.dot_dimension_numbers<[1], [0], [0], [1], [0, 0, 1, 1], [], []>} : vector<8x32xf32>, vector<32x8xf32>, vector<8x8xf32> -> vector<8x8xf32>
    %c0_15 = arith.constant 0 : index
    %c0_16 = arith.constant 0 : index
    %17 = vector.load %arg7[%c0_15, %c0_16] : memref<1x8xf32, #tpu.memory_space<vmem>>, vector<1x8xf32>
    %18 = vector.broadcast %17 : vector<1x8xf32> to vector<8x8xf32>
    %19 = arith.addf %16, %18 : vector<8x8xf32>
    %c0_17 = arith.constant 0 : index
    %c0_18 = arith.constant 0 : index
    %20 = vector.load %arg8[%c0_17, %c0_18] : memref<8x8xf32, #tpu.memory_space<vmem>>, vector<8x8xf32>
    tpu.vector_store %arg8[%c0_17, %c0_18], %19 {strides = array<i32>} : memref<8x8xf32, #tpu.memory_space<vmem>>, vector<8x8xf32>,
    return
  }
  func.func @transform_0(%arg0: i32) -> (i32, i32) {
    %c0_i32 = arith.constant 0 : i32
    %c0_i32_0 = arith.constant 0 : i32
    return %arg0, %c0_i32 : i32, i32
  }
  func.func @transform_1(%arg0: i32) -> (i32, i32) {
    %c0_i32 = arith.constant 0 : i32
    %c0_i32_0 = arith.constant 0 : i32
    %c0_i32_1 = arith.constant 0 : i32
    return %c0_i32, %c0_i32_0 : i32, i32
  }
  func.func @transform_2(%arg0: i32) -> (i32, i32) {
    %c0_i32 = arith.constant 0 : i32
    %c0_i32_0 = arith.constant 0 : i32
    %c0_i32_1 = arith.constant 0 : i32
    return %c0_i32, %c0_i32_0 : i32, i32
  }
  func.func @transform_3(%arg0: i32) -> (i32, i32) {
    %c0_i32 = arith.constant 0 : i32
    %c0_i32_0 = arith.constant 0 : i32
    %c0_i32_1 = arith.constant 0 : i32
    return %c0_i32, %c0_i32_0 : i32, i32
  }
  func.func @transform_4(%arg0: i32) -> (i32, i32) {
    %c0_i32 = arith.constant 0 : i32
    %c0_i32_0 = arith.constant 0 : i32
    %c0_i32_1 = arith.constant 0 : i32
    return %c0_i32, %c0_i32_0 : i32, i32
  }
  func.func @transform_5(%arg0: i32) -> (i32, i32) {
    %c0_i32 = arith.constant 0 : i32
    %c0_i32_0 = arith.constant 0 : i32
    %c0_i32_1 = arith.constant 0 : i32
    return %c0_i32, %c0_i32_0 : i32, i32
  }
  func.func @transform_6(%arg0: i32) -> (i32, i32) {
    %c0_i32 = arith.constant 0 : i32
    %c0_i32_0 = arith.constant 0 : i32
    %c0_i32_1 = arith.constant 0 : i32
    return %c0_i32, %c0_i32_0 : i32, i32
  }
  func.func @transform_7(%arg0: i32) -> (i32, i32) {
    %c0_i32 = arith.constant 0 : i32
    %c0_i32_0 = arith.constant 0 : i32
    return %arg0, %c0_i32 : i32, i32
  }
}

</mosaic_0001>

<bundles_post_ra>
// kernel: squashed_gaussian_actor_forward.1
= control target key start
LH: loop header
LB: loop body
LE: loop exit
PB: predicated region body
PF: predicated region fallthrough
CT: control target
= control target key end

     0   :  { %12 = vsyncpa [#allocation3], 0  ;;  %s405_s24 = smov [#allocation2]   ;;  %s508_s0 = inlined_call_operand.vmem [shape: f32[8,32], index: 0, kind: input, shape index: {}]   ;;  %s509_s1 = inlined_call_operand.vmem [shape: f32[32,32], index: 1, kind: input, shape index: {}]   ;;  %s510_s2 = inlined_call_operand.vmem [shape: f32[1,32], index: 2, kind: input, shape index: {}]   ;;  %s511_s3 = inlined_call_operand.hbm [shape: f32[32,32], index: 3, kind: input, shape index: {}]   ;;  %s512_s4 = inlined_call_operand.vmem [shape: f32[1,32], index: 4, kind: input, shape index: {}]   ;;  %s513_s5 = inlined_call_operand.vmem [shape: f32[32,8], index: 5, kind: input, shape index: {}]   ;;  %s514_s6 = inlined_call_operand.vmem [shape: f32[1,8], index: 6, kind: input, shape index: {}]   ;;  %s515_s7 = inlined_call_operand.vmem [shape: f32[8,8], index: 7, kind: output, shape index: {}]  }
   0x1   :  { %s24_s25 = sshll.u32 %s405_s24, 4  ;;  %s381_s28 = scalar_lea.hbm %s511_s3, 512  ;;  %s25_s25 = int_to_ptr.vmem [resolvable:$true] %s24_s25 }
   0x2   :  { %p382_p0 = scmp.ne.s32.totalorder %s511_s3, %s381_s28  ;;  %p385_p1 = scmp.lt.u32.totalorder %s381_s28, %s511_s3 }
   0x4   :  { %p387_p2 = pnand %p385_p1, %p382_p0 }
   0x6   :  { %390 = shalt.err (!%p387_p2)
}
   0x7   :  { %s391_s10 = scalar_lea.vmem %s25_s25, 512  ;;  %p396_p4 = scmp.lt.s32.totalorder %s25_s25, %s25_s25 }
   0x8   :  { %p392_p3 = scmp.ne.s32.totalorder %s25_s25, %s391_s10  ;;  %p397_p5 = scmp.lt.s32.totalorder %s391_s10, %s391_s10 }
   0xa   :  { %p398_p6 = por %p397_p5, %p396_p4 }
   0xc   :  { %p399_p7 = pnand %p398_p6, %p392_p3 }
   0xe   :  { %402 = shalt.err (!%p399_p7)
}
   0xf   :  { %s406_s11 = smov 128   ;;  %s407_s12 = smov 8  }
  0x10   :  { %30 = dma.hbm_to_vmem [thread:$0]  %s511_s3, 512, %s25_s25, [#allocation3], %s406_s11, %s406_s11, %s407_s12  }
  0x11   :  { %403 = dma.done.wait [#allocation3], 512  }
  0x12   :  { %404 = vsyncadd [#allocation3], 4294966784  ;;  %v408_v0 = vmov 0.0|0.0   ;;  %vm409_vm0 = vmmov 0   ;;  %v410_v1 = vmov 0.0   ;;  %v41_v2 = vld [vmem:[%s509_s1] sm:$0xff] }
  0x13   :  { %357 = vmatprep.subr.bf16.mxu0 %v408_v0  ;;  %332 = vmatprep.mubr.msk.f32.mxu0 %vm409_vm0, %v410_v1  ;;  %v42_v3 = vld [vmem:[%s509_s1 + $0x8] sm:$0xff]  ;;  %v43_v4 = vld [vmem:[%s509_s1 + $0x10] sm:$0xff]  ;;  %v44_v6 = vld [vmem:[%s509_s1 + $0x18] sm:$0xff]  ;;  %vm52_vm1 = vcmask 261120   ;;  %vm296_vm2 = vcmask 64512  }
  0x14   :  { %363 = vmatprep.subr.bf16.mxu1 %v408_v0  ;;  %343 = vmatprep.mubr.msk.f32.mxu1 %vm409_vm0, %v410_v1  ;;  %v358_v5 = vpack.c.bf16 %v42_v3, %v41_v2  ;;  %v127_v7 = vld [vmem:[#allocation2] sm:$0xff]  ;;  %v128_v8 = vld [vmem:[#allocation2 + $0x8] sm:$0xff]  ;;  %v361_v9 = vpack.c.bf16 %v44_v6, %v43_v4  ;;  %v129_v12 = vld [vmem:[#allocation2 + $0x10] sm:$0xff] }
  0x15   :  { %v364_v10 = vpack.c.bf16 %v128_v8, %v127_v7  ;;  %v40_v11 = vld [vmem:[%s508_s0] sm:$0xff]  ;;  %v130_v13 = vld [vmem:[#allocation2 + $0x18] sm:$0xff]  ;;  %v213_v16 = vld [vmem:[%s513_s5 + $0x8] sm:$0xff] }
  0x16   :  { %359 = vmatpush3.bf16.msra.mxu0 %v358_v5  ;;  %v367_v14 = vpack.c.bf16 %v130_v13, %v129_v12  ;;  %v212_v15 = vld [vmem:[%s513_s5] sm:$0xff]  ;;  %v214_v23 = vld [vmem:[%s513_s5 + $0x10] sm:$0xff]  ;;  %v215_v24 = vld [vmem:[%s513_s5 + $0x18] sm:$0xff] }
  0x17   :  { %360 = vmatprep.subr.bf16.mxu0 %v408_v0  ;;  %365 = vmatpush3.bf16.msra.mxu1 %v364_v10  ;;  %v370_v17 = vpack.c.bf16 %v213_v16, %v212_v15  ;;  %v303_v18 = vld [vmem:[%s510_s2] ss:$0 sm:$0xff]  ;;  %v373_v25 = vpack.c.bf16 %v215_v24, %v214_v23 }
  0x18   :  { %366 = vmatprep.subr.bf16.mxu1 %v408_v0  ;;  %v305_v26 = vld [vmem:[%s512_s4] ss:$0 sm:$0xff] }
  0x19   :  { %v307_v31 = vld [vmem:[%s514_s6] ss:$0 sm:$0xff] }
  0x1a   :  { %362 = vmatpush3.bf16.msra.mxu0 %v361_v9 }
  0x1b   :  { %369 = vmatprep.subr.bf16.mxu0 %v408_v0  ;;  %368 = vmatpush3.bf16.msra.mxu1 %v367_v14 }
  0x1d   :  { %333 = vmatmul.mubr.msk.f32.vlgmr.msra.gmra.mrb[0].mxu0 %vm52_vm1, %v40_v11 }
  0x1e   :  { %354 = vmatprep.mubr.msk.f32.mxu0 %vm409_vm0, %v410_v1  ;;  %371 = vmatpush3.bf16.msra.mxu0 %v370_v17 }
  0x1f   :  { %372 = vmatprep.subr.bf16.mxu0 %v408_v0 }
  0x22   :  { %374 = vmatpush3.bf16.msra.mxu0 %v373_v25 }
  0xf0   :  { %v122_v19 = vpop.f32.mrb[0].mxu0 }
  0xf1   :  { %v123_v20 = vadd.f32 %v303_v18, %v122_v19  ;;  %v334_v21 = vpop.f32.mrb[1].mxu0 }
  0xf3   :  { %v126_v22 = vmax.f32 %v123_v20, 0.0 }
  0xf5   :  { %344 = vmatmul.mubr.msk.f32.vlgmr.msra.gmra.mrb[0].mxu1 %vm52_vm1, %v126_v22 }
 0x1c8   :  { %v207_v27 = vpop.f32.mrb[0].mxu1 }
 0x1c9   :  { %v208_v28 = vadd.f32 %v305_v26, %v207_v27  ;;  %v345_v29 = vpop.f32.mrb[1].mxu1 }
 0x1cb   :  { %v211_v30 = vmax.f32 %v208_v28, 0.0 }
 0x1cd   :  { %355 = vmatmul.mubr.msk.f32.vlgmr.msra.gmra.mrb[2].mxu0 %vm52_vm1, %v211_v30 }
 0x2a0   :  { %v292_v32 = vpop.f32.mrb[2].mxu0 }
 0x2a1   :  { %v293_v33 = vadd.f32 %v307_v31, %v292_v32  ;;  %v356_v34 = vpop.f32.mrb[3].mxu0 }
 0x2a3   :  { %297 = vst.msk [vmem:[%s515_s7] sm:$0xff] %vm296_vm2, %v293_v33 }
 0x2a4   :  { %302 = vsyncpa [#allocation3], 1 }

</bundles_post_ra>
